<compile_context>
chip_gen: v7x
topology: tpu7x:2x2x1
jax: 0.10.0
libtpu: 0.0.40
codegen_flags: <defaults>
</compile_context>

<pallas_src>
import functools
import math

import jax
import jax.numpy as jnp
from jax import lax
from jax.experimental import pallas as pl
from jax.experimental.pallas import tpu as pltpu

# -----------------------------------------------------------------------------
# Scaled-down configuration.  The reference network uses 512x512 inputs and up to
# 2048 channels; here channel widths are divided by 16 and the spatial size by 8,
# keeping the exact op structure / strides / dilations.
# -----------------------------------------------------------------------------
NUM_CLASSES = 5
IN_H = IN_W = 64
OUT_SIZE = 64            # reference interpolates to (512, 512)
C_STEM_A = 4             # reference: 64
C_STEM_B = 8             # reference: 128
PLANES = (4, 8, 16, 32)  # reference: (64, 128, 256, 512)
LAYERS = (3, 4, 23, 3)
EXPANSION = 4
DSN_MID = 32             # reference: 512
OUT_MID1 = 64            # reference: 1024
OUT_MID2 = 16            # reference: 256
BN_EPS = 1e-5

ACT_DTYPE = jnp.bfloat16
VMEM_LIMIT = 32 * 1024 * 1024   # safe on v5e/v6e/v7x (v7x physical VMEM is 64 MiB)


def _round_up(v, m):
    return (v + m - 1) // m * m


def _vmem():
    return pl.BlockSpec(memory_space=pltpu.MemorySpace.VMEM)


# -----------------------------------------------------------------------------
# Tiled GEMM with fused BN affine + activation (+ optional residual) epilogue
# -----------------------------------------------------------------------------
def _gemm_kernel(x_ref, w_ref, scale_ref, shift_ref, o_ref, acc_ref, *, act):
    k = pl.program_id(2)

    @pl.when(k == 0)
    def _():
        acc_ref[...] = jnp.zeros_like(acc_ref)

    acc_ref[...] += jnp.dot(x_ref[...], w_ref[...], preferred_element_type=jnp.float32)

    @pl.when(k == pl.num_programs(2) - 1)
    def _():
        y = acc_ref[...] * scale_ref[...] + shift_ref[...]
        if act == "relu":
            y = jnp.maximum(y, 0.0)
        elif act == "leaky_relu":
            y = jnp.where(y >= 0.0, y, 0.01 * y)
        o_ref[...] = y.astype(o_ref.dtype)


def _gemm_res_kernel(x_ref, w_ref, scale_ref, shift_ref, r_ref, o_ref, acc_ref, *, act):
    k = pl.program_id(2)

    @pl.when(k == 0)
    def _():
        acc_ref[...] = jnp.zeros_like(acc_ref)

    acc_ref[...] += jnp.dot(x_ref[...], w_ref[...], preferred_element_type=jnp.float32)

    @pl.when(k == pl.num_programs(2) - 1)
    def _():
        y = acc_ref[...] * scale_ref[...] + shift_ref[...] + r_ref[...].astype(jnp.float32)
        if act == "relu":
            y = jnp.maximum(y, 0.0)
        o_ref[...] = y.astype(o_ref.dtype)


@functools.partial(jax.jit, static_argnames=("act",))
def gemm_affine_act(x, w, scale, shift, act="identity", residual=None):
    """o = act((x @ w) * scale + shift [+ residual]); bf16 operands, f32 accumulation."""
    M, K = x.shape
    N = w.shape[1]
    tn, tk = 128, 128
    tm = 256 if M >= 256 else _round_up(M, 8)
    Mp, Kp, Np = _round_up(M, tm), _round_up(K, tk), _round_up(N, tn)

    xp = jnp.pad(x.astype(ACT_DTYPE), ((0, Mp - M), (0, Kp - K)))
    wp = jnp.pad(w.astype(ACT_DTYPE), ((0, Kp - K), (0, Np - N)))
    sc = jnp.pad(scale.reshape(1, N).astype(jnp.float32), ((0, 0), (0, Np - N)))
    sh = jnp.pad(shift.reshape(1, N).astype(jnp.float32), ((0, 0), (0, Np - N)))

    grid = (Mp // tm, Np // tn, Kp // tk)
    x_spec = pl.BlockSpec((tm, tk), lambda i, j, k: (i, k))
    w_spec = pl.BlockSpec((tk, tn), lambda i, j, k: (k, j))
    v_spec = pl.BlockSpec((1, tn), lambda i, j, k: (0, j))
    o_spec = pl.BlockSpec((tm, tn), lambda i, j, k: (i, j))
    cp = pltpu.CompilerParams(
        dimension_semantics=("parallel", "parallel", "arbitrary"),
        vmem_limit_bytes=VMEM_LIMIT)
    scratch = [pltpu.VMEM((tm, tn), jnp.float32)]

    if residual is None:
        out = pl.pallas_call(
            functools.partial(_gemm_kernel, act=act),
            out_shape=jax.ShapeDtypeStruct((Mp, Np), ACT_DTYPE),
            grid=grid,
            in_specs=[x_spec, w_spec, v_spec, v_spec],
            out_specs=o_spec,
            scratch_shapes=scratch,
            compiler_params=cp,
        )(xp, wp, sc, sh)
    else:
        rp = jnp.pad(residual.astype(ACT_DTYPE), ((0, Mp - M), (0, Np - N)))
        r_spec = pl.BlockSpec((tm, tn), lambda i, j, k: (i, j))
        out = pl.pallas_call(
            functools.partial(_gemm_res_kernel, act=act),
            out_shape=jax.ShapeDtypeStruct((Mp, Np), ACT_DTYPE),
            grid=grid,
            in_specs=[x_spec, w_spec, v_spec, v_spec, r_spec],
            out_specs=o_spec,
            scratch_shapes=scratch,
            compiler_params=cp,
        )(xp, wp, sc, sh, rp)
    return out[:M, :N]


# -----------------------------------------------------------------------------
# Convolution wrappers (NHWC; im2col glue + fused Pallas GEMM)
# -----------------------------------------------------------------------------
@functools.partial(jax.jit, static_argnames=("stride", "act"))
def conv2d_1x1(x, w_mat, scale, shift, stride=1, act="identity", residual=None):
    if stride > 1:
        x = x[:, ::stride, ::stride, :]
    B, H, W, C = x.shape
    N = w_mat.shape[1]
    xr = x.reshape(B * H * W, C)
    res = None if residual is None else residual.reshape(B * H * W, N)
    y = gemm_affine_act(xr, w_mat, scale, shift, act=act, residual=res)
    return y.reshape(B, H, W, N)


@functools.partial(jax.jit, static_argnames=("stride", "dilation", "padding", "act"))
def conv2d_3x3(x, w_mat, scale, shift, stride=1, dilation=1, padding=1, act="identity"):
    B, H, W, C = x.shape
    N = w_mat.shape[1]
    Ho = (H + 2 * padding - dilation * 2 - 1) // stride + 1
    Wo = (W + 2 * padding - dilation * 2 - 1) // stride + 1
    xp = jnp.pad(x, ((0, 0), (padding, padding), (padding, padding), (0, 0)))
    cols = []
    for kh in range(3):
        for kw in range(3):
            cols.append(xp[:, kh * dilation:kh * dilation + (Ho - 1) * stride + 1:stride,
                            kw * dilation:kw * dilation + (Wo - 1) * stride + 1:stride, :])
    patches = jnp.concatenate(cols, axis=-1).reshape(B * Ho * Wo, 9 * C)
    y = gemm_affine_act(patches, w_mat, scale, shift, act=act)
    return y.reshape(B, Ho, Wo, N)


# -----------------------------------------------------------------------------
# MaxPool 3x3 / stride 2 / pad 1 — 9-way max in a lane-dense layout
# -----------------------------------------------------------------------------
def _max9_kernel(p_ref, o_ref):
    o_ref[...] = jnp.max(p_ref[...], axis=0)


@jax.jit
def maxpool_3x3_s2_p1(x):
    B, H, W, C = x.shape
    Ho = (H + 2 - 3) // 2 + 1
    Wo = (W + 2 - 3) // 2 + 1
    xp = jnp.pad(x, ((0, 0), (1, 1), (1, 1), (0, 0)), constant_values=-1e30)
    wins = []
    for kh in range(3):
        for kw in range(3):
            wins.append(xp[:, kh:kh + 2 * (Ho - 1) + 1:2, kw:kw + 2 * (Wo - 1) + 1:2, :])
    T = B * Ho * Wo * C
    Tp = _round_up(T, 8 * 128)
    R = Tp // 128
    stacked = jnp.stack(
        [jnp.pad(w_.reshape(T), (0, Tp - T)).reshape(R, 128) for w_ in wins], axis=0)
    out = pl.pallas_call(
        _max9_kernel,
        out_shape=jax.ShapeDtypeStruct((R, 128), x.dtype),
        in_specs=[_vmem()],
        out_specs=_vmem(),
    )(stacked)
    return out.reshape(Tp)[:T].reshape(B, Ho, Wo, C)


# -----------------------------------------------------------------------------
# Flash-style non-local attention: softmax(theta @ phi^T) @ g
# -----------------------------------------------------------------------------
def _attn_kernel(th_ref, pht_ref, g_ref, o_ref, m_sc, l_sc, acc_sc, *, n_valid, tkv):
    kv = pl.program_id(2)

    @pl.when(kv == 0)
    def _():
        m_sc[...] = jnp.full_like(m_sc, -1e30)
        l_sc[...] = jnp.zeros_like(l_sc)
        acc_sc[...] = jnp.zeros_like(acc_sc)

    q = th_ref[0]            # (tq, Cip)   bf16
    kt = pht_ref[0]          # (Cip, tkv)  bf16 (phi pre-transposed)
    v = g_ref[0]             # (tkv, Cip)  bf16
    s = jnp.dot(q, kt, preferred_element_type=jnp.float32)            # (tq, tkv)
    col = kv * tkv + lax.broadcasted_iota(jnp.int32, s.shape, 1)
    s = jnp.where(col < n_valid, s, -1e30)                             # mask padded kv

    m_new = jnp.maximum(m_sc[...], jnp.max(s, axis=-1, keepdims=True))
    alpha = jnp.exp(m_sc[...] - m_new)
    p = jnp.exp(s - m_new)
    l_sc[...] = alpha * l_sc[...] + jnp.sum(p, axis=-1, keepdims=True)
    acc_sc[...] = alpha * acc_sc[...] + jnp.dot(
        p.astype(v.dtype), v, preferred_element_type=jnp.float32)
    m_sc[...] = m_new

    @pl.when(kv == pl.num_programs(2) - 1)
    def _():
        o_ref[0] = (acc_sc[...] * pl.reciprocal(l_sc[...], approx=True)).astype(o_ref.dtype)


@jax.jit
def nonlocal_attention(theta, phi, g):
    B, N, Ci = theta.shape
    Cip = _round_up(Ci, 128)
    tq = 128 if N >= 128 else _round_up(N, 8)
    tkv = tq
    Np = _round_up(N, tq)

    def pad_seq(t):
        return jnp.pad(t.astype(ACT_DTYPE), ((0, 0), (0, Np - N), (0, Cip - Ci)))

    th = pad_seq(theta)
    gg = pad_seq(g)
    pht = jnp.pad(phi.astype(ACT_DTYPE).transpose(0, 2, 1),
                  ((0, 0), (0, Cip - Ci), (0, Np - N)))

    out = pl.pallas_call(
        functools.partial(_attn_kernel, n_valid=N, tkv=tkv),
        out_shape=jax.ShapeDtypeStruct((B, Np, Cip), ACT_DTYPE),
        grid=(B, Np // tq, Np // tkv),
        in_specs=[
            pl.BlockSpec((1, tq, Cip), lambda b, qi, ki: (b, qi, 0)),
            pl.BlockSpec((1, Cip, tkv), lambda b, qi, ki: (b, 0, ki)),
            pl.BlockSpec((1, tkv, Cip), lambda b, qi, ki: (b, ki, 0)),
        ],
        out_specs=pl.BlockSpec((1, tq, Cip), lambda b, qi, ki: (b, qi, 0)),
        scratch_shapes=[pltpu.VMEM((tq, 1), jnp.float32),
                        pltpu.VMEM((tq, 1), jnp.float32),
                        pltpu.VMEM((tq, Cip), jnp.float32)],
        compiler_params=pltpu.CompilerParams(
            dimension_semantics=("parallel", "parallel", "arbitrary"),
            vmem_limit_bytes=VMEM_LIMIT),
    )(th, pht, gg)
    return out[:, :N, :Ci]


# -----------------------------------------------------------------------------
# Fused bilinear upsample (align_corners=True): out = Ah @ x @ Aw^T per (B,C) slab
# -----------------------------------------------------------------------------
def _interp_matrix(in_size, out_size):
    if in_size == 1:
        return jnp.ones((out_size, 1), jnp.float32)
    src = jnp.arange(out_size, dtype=jnp.float32) * (in_size - 1) / (out_size - 1)
    i0 = jnp.clip(jnp.floor(src).astype(jnp.int32), 0, in_size - 2)
    frac = src - i0.astype(jnp.float32)
    rows = jnp.arange(out_size)
    A = jnp.zeros((out_size, in_size), jnp.float32)
    A = A.at[rows, i0].add(1.0 - frac)
    A = A.at[rows, i0 + 1].add(frac)
    return A


def _upsample_kernel(x_ref, ah_ref, awt_ref, o_ref):
    xs = x_ref[0].astype(jnp.float32)                                   # (H, W)
    t = jnp.dot(ah_ref[...], xs, preferred_element_type=jnp.float32)    # (OH, W)
    o_ref[0] = jnp.dot(t, awt_ref[...], preferred_element_type=jnp.float32)


@functools.partial(jax.jit, static_argnames=("out_h", "out_w"))
def upsample_bilinear_align_corners(x_nchw, out_h, out_w):
    B, C, H, W = x_nchw.shape
    Ah = _interp_matrix(H, out_h)          # (out_h, H)
    AwT = _interp_matrix(W, out_w).T       # (W, out_w)
    xs = x_nchw.reshape(B * C, H, W)
    out = pl.pallas_call(
        _upsample_kernel,
        out_shape=jax.ShapeDtypeStruct((B * C, out_h, out_w), jnp.float32),
        grid=(B * C,),
        in_specs=[pl.BlockSpec((1, H, W), lambda i: (i, 0, 0)),
                  pl.BlockSpec((out_h, H), lambda i: (0, 0)),
                  pl.BlockSpec((W, out_w), lambda i: (0, 0))],
        out_specs=pl.BlockSpec((1, out_h, out_w), lambda i: (i, 0, 0)),
        compiler_params=pltpu.CompilerParams(
            dimension_semantics=("parallel",),
            vmem_limit_bytes=VMEM_LIMIT),
    )(xs, Ah, AwT)
    return out.reshape(B, C, out_h, out_w)


# -----------------------------------------------------------------------------
# Deterministic parameter construction (weights stored in GEMM layout)
# -----------------------------------------------------------------------------
_ROOT_KEY = jax.random.PRNGKey(0)
_KEY_COUNTER = [0]


def _next_key():
    _KEY_COUNTER[0] += 1
    return jax.random.fold_in(_ROOT_KEY, _KEY_COUNTER[0])


def init_conv1x1_w(cin, cout):
    return jax.random.normal(_next_key(), (cin, cout), jnp.float32) / math.sqrt(cin)


def init_conv3x3_w(cin, cout):
    return jax.random.normal(_next_key(), (9 * cin, cout), jnp.float32) / math.sqrt(9 * cin)


def init_bias(c):
    return 0.01 * jax.random.normal(_next_key(), (c,), jnp.float32)


def init_bn_folded(c, conv_bias=None):
    """Inference-mode BatchNorm folded to (scale, shift). Optionally folds a conv bias."""
    gamma = 1.0 + 0.1 * jax.random.normal(_next_key(), (c,), jnp.float32)
    beta = 0.05 * jax.random.normal(_next_key(), (c,), jnp.float32)
    mean = 0.05 * jax.random.normal(_next_key(), (c,), jnp.float32)
    var = jnp.abs(1.0 + 0.1 * jax.random.normal(_next_key(), (c,), jnp.float32))
    scale = gamma / jnp.sqrt(var + BN_EPS)
    shift = beta - mean * scale
    if conv_bias is not None:
        shift = shift + conv_bias * scale
    return scale, shift


def make_bottleneck(inplanes, planes, stride=1, dilation=1, downsample=False, multi_grid=1):
    d = dilation * multi_grid
    p = {
        "conv1_w": init_conv1x1_w(inplanes, planes),
        "bn1": init_bn_folded(planes),
        "conv2_w": init_conv3x3_w(planes, planes),
        "bn2": init_bn_folded(planes),
        "conv3_w": init_conv1x1_w(planes, planes * EXPANSION),
        "bn3": init_bn_folded(planes * EXPANSION),
        "stride": stride,
        "dilation": d,
    }
    if downsample:
        p["down_w"] = init_conv1x1_w(inplanes, planes * EXPANSION)
        p["down_bn"] = init_bn_folded(planes * EXPANSION)
    return p


def make_layer(inplanes, planes, blocks, stride=1, dilation=1, multi_grid=1):
    gen = lambda i, g: g[i % len(g)] if isinstance(g, tuple) else 1
    need_down = stride != 1 or inplanes != planes * EXPANSION
    out = [make_bottleneck(inplanes, planes, stride, dilation, need_down, gen(0, multi_grid))]
    inplanes = planes * EXPANSION
    for i in range(1, blocks):
        out.append(make_bottleneck(inplanes, planes, 1, dilation, False, gen(i, multi_grid)))
    return out, inplanes


def make_params():
    params = {}
    params["conv1_w"] = init_conv3x3_w(3, C_STEM_A)
    params["bn1"] = init_bn_folded(C_STEM_A)
    params["conv2_w"] = init_conv3x3_w(C_STEM_A, C_STEM_A)
    params["bn2"] = init_bn_folded(C_STEM_A)
    params["conv3_w"] = init_conv3x3_w(C_STEM_A, C_STEM_B)
    params["bn3"] = init_bn_folded(C_STEM_B)

    inplanes = C_STEM_B
    params["layer1"], inplanes = make_layer(inplanes, PLANES[0], LAYERS[0])
    params["layer2"], inplanes = make_layer(inplanes, PLANES[1], LAYERS[1], stride=2)
    params["layer3"], inplanes = make_layer(inplanes, PLANES[2], LAYERS[2], stride=2, dilation=2)
    params["layer4"], inplanes = make_layer(inplanes, PLANES[3], LAYERS[3], stride=2, dilation=4,
                                            multi_grid=(1, 1, 1))
    c_feat = inplanes            # scaled stand-in for 2048
    inter = c_feat // 2

    # TODO(synk): `block` is undefined in the reference source; implemented as the standard
    # embedded-Gaussian non-local block (theta/phi/g 1x1 convs -> softmax attention -> W_z + x).
    params["nl"] = {
        "theta_w": init_conv1x1_w(c_feat, inter), "theta_b": init_bias(inter),
        "phi_w": init_conv1x1_w(c_feat, inter), "phi_b": init_bias(inter),
        "g_w": init_conv1x1_w(c_feat, inter), "g_b": init_bias(inter),
        "wz_w": init_conv1x1_w(inter, c_feat), "wz_b": init_bias(c_feat),
    }

    dsn_b1 = init_bias(DSN_MID)
    params["dsn"] = {
        "conv1_w": init_conv3x3_w(c_feat, DSN_MID),
        "bn1": init_bn_folded(DSN_MID, conv_bias=dsn_b1),
        "conv2_w": init_conv1x1_w(DSN_MID, NUM_CLASSES),
        "conv2_b": init_bias(NUM_CLASSES),
    }

    out_b1 = init_bias(OUT_MID1)
    out_b2 = init_bias(OUT_MID2)
    params["outconv"] = {
        "conv1_w": init_conv3x3_w(c_feat, OUT_MID1),
        "bn1": init_bn_folded(OUT_MID1, conv_bias=out_b1),
        "conv2_w": init_conv1x1_w(OUT_MID1, OUT_MID2),
        "bn2": init_bn_folded(OUT_MID2, conv_bias=out_b2),
        "conv3_w": init_conv1x1_w(OUT_MID2, NUM_CLASSES),
        "conv3_b": init_bias(NUM_CLASSES),
    }
    return params


# -----------------------------------------------------------------------------
# Forward pass (mirrors Non_local.forward); activations NHWC bf16
# -----------------------------------------------------------------------------
def bottleneck_forward(x, p):
    s, b = p["bn1"]
    out = conv2d_1x1(x, p["conv1_w"], s, b, act="relu")
    s, b = p["bn2"]
    out = conv2d_3x3(out, p["conv2_w"], s, b, stride=p["stride"],
                     dilation=p["dilation"], padding=p["dilation"], act="relu")
    if "down_w" in p:
        s2, b2 = p["down_bn"]
        residual = conv2d_1x1(x, p["down_w"], s2, b2, stride=p["stride"], act="identity")
    else:
        residual = x
    s, b = p["bn3"]
    # residual add + final ReLU fused into the conv3 GEMM epilogue
    return conv2d_1x1(out, p["conv3_w"], s, b, act="relu", residual=residual)


def non_local_forward(x, p):
    B, H, W, C = x.shape
    inter = p["theta_w"].shape[1]
    ones_i = jnp.ones((inter,), jnp.float32)
    theta = conv2d_1x1(x, p["theta_w"], ones_i, p["theta_b"])
    phi = conv2d_1x1(x, p["phi_w"], ones_i, p["phi_b"])
    g = conv2d_1x1(x, p["g_w"], ones_i, p["g_b"])
    to_seq = lambda t: t.reshape(B, H * W, inter)            # NHWC: no transpose needed
    y = nonlocal_attention(to_seq(theta), to_seq(phi), to_seq(g))
    y = y.reshape(B, H, W, inter)
    # W_z conv + residual add fused into the GEMM epilogue
    return conv2d_1x1(y, p["wz_w"], jnp.ones((C,), jnp.float32), p["wz_b"],
                      act="identity", residual=x)


def dsn_forward(c4, p):
    # TODO(synk): InPlaceABNSync is undefined in the reference; modeled as inference-mode
    # BatchNorm followed by its default leaky_relu(0.01) activation.  Dropout2d(0.1) is
    # identity at inference.
    s, b = p["bn1"]
    x = conv2d_3x3(c4, p["conv1_w"], s, b, act="leaky_relu")
    x = conv2d_1x1(x, p["conv2_w"], jnp.ones((NUM_CLASSES,), jnp.float32), p["conv2_b"])
    return x


def outconv_forward(x, p):
    s, b = p["bn1"]
    x = conv2d_3x3(x, p["conv1_w"], s, b, act="relu")
    s, b = p["bn2"]
    x = conv2d_1x1(x, p["conv2_w"], s, b, act="relu")
    x = conv2d_1x1(x, p["conv3_w"], jnp.ones((NUM_CLASSES,), jnp.float32), p["conv3_b"])
    return x


def non_local_net_forward(params, x_nchw):
    # TODO(synk): self.backbone = models.resnet101(pretrained=True) is constructed but never
    # used in the reference forward(); it is omitted here (no pretrained checkpoints loaded).
    x = x_nchw.transpose(0, 2, 3, 1).astype(ACT_DTYPE)   # one-time NCHW -> NHWC
    s, b = params["bn1"]
    x = conv2d_3x3(x, params["conv1_w"], s, b, stride=2, act="relu")
    s, b = params["bn2"]
    x = conv2d_3x3(x, params["conv2_w"], s, b, act="relu")
    s, b = params["bn3"]
    x = conv2d_3x3(x, params["conv3_w"], s, b, act="relu")
    x = maxpool_3x3_s2_p1(x)
    for blk in params["layer1"]:
        x = bottleneck_forward(x, blk)
    for blk in params["layer2"]:
        x = bottleneck_forward(x, blk)
    for blk in params["layer3"]:
        x = bottleneck_forward(x, blk)
    for blk in params["layer4"]:
        x = bottleneck_forward(x, blk)
    c4 = x
    x = non_local_forward(c4, params["nl"])
    x_dsn = dsn_forward(c4, params["dsn"])
    x_dsn = upsample_bilinear_align_corners(x_dsn.transpose(0, 3, 1, 2),
                                            out_h=OUT_SIZE, out_w=OUT_SIZE)
    x = outconv_forward(x, params["outconv"])
    x = upsample_bilinear_align_corners(x.transpose(0, 3, 1, 2),
                                        out_h=OUT_SIZE, out_w=OUT_SIZE)
    return [x, x_dsn]


if __name__ == "__main__":
    params = make_params()
    x = jax.random.normal(jax.random.PRNGKey(0), (2, 3, IN_H, IN_W), jnp.float32)
    out, out_dsn = non_local_net_forward(params, x)
    jax.block_until_ready(out)
    jax.block_until_ready(out_dsn)
    assert out.shape == (2, NUM_CLASSES, OUT_SIZE, OUT_SIZE), out.shape
    assert out_dsn.shape == (2, NUM_CLASSES, OUT_SIZE, OUT_SIZE), out_dsn.shape
    assert bool(jnp.isfinite(out).all()) and bool(jnp.isfinite(out_dsn).all())
    print("KERNEL_OK")
</pallas_src>

<mosaic_0001>
module attributes {stable_mosaic.version = 11 : i64} {
  func.func @_gemm_kernel(%arg0: i32, %arg1: i32, %arg2: i32, %arg3: memref<256x128xbf16, #tpu.memory_space<vmem>>, %arg4: memref<128x128xbf16, #tpu.memory_space<vmem>>, %arg5: memref<1x128xf32, #tpu.memory_space<vmem>>, %arg6: memref<1x128xf32, #tpu.memory_space<vmem>>, %arg7: memref<256x128xbf16, #tpu.memory_space<vmem>>, %arg8: memref<256x128xf32, #tpu.memory_space<vmem>>) attributes {dimension_semantics = [#tpu.dimension_semantics<parallel>, #tpu.dimension_semantics<parallel>, #tpu.dimension_semantics<arbitrary>], iteration_bounds = array<i64: 8, 1, 1>, scalar_prefetch = 0 : i64, scratch_operands = 1 : i64, tpu.core_type = #tpu.core_type<tc>, window_params = [{transform_indices = @transform_0, window_bounds = array<i64: 256, 128>}, {transform_indices = @transform_1, window_bounds = array<i64: 128, 128>}, {transform_indices = @transform_2, window_bounds = array<i64: 1, 128>}, {transform_indices = @transform_3, window_bounds = array<i64: 1, 128>}, {transform_indices = @transform_4, window_bounds = array<i64: 256, 128>}]} {
    %c0_i32 = arith.constant 0 : i32
    %0 = arith.cmpi eq, %arg2, %c0_i32 : i32
    %1 = arith.extui %0 : i1 to i32
    %c0_i32_0 = arith.constant 0 : i32
    %2 = arith.cmpi ne, %1, %c0_i32_0 : i32
    scf.if %2 {
      %cst_10 = arith.constant 0.000000e+00 : f32
      %12 = vector.broadcast %cst_10 : f32 to vector<256x128xf32>
      %c0_11 = arith.constant 0 : index
      %c0_12 = arith.constant 0 : index
      %13 = vector.load %arg8[%c0_11, %c0_12] : memref<256x128xf32, #tpu.memory_space<vmem>>, vector<256x128xf32>
      tpu.vector_store %arg8[%c0_11, %c0_12], %12 {strides = array<i32>} : memref<256x128xf32, #tpu.memory_space<vmem>>, vector<256x128xf32>,
    } else {
    }
    %c0 = arith.constant 0 : index
    %c0_1 = arith.constant 0 : index
    %3 = vector.load %arg8[%c0, %c0_1] : memref<256x128xf32, #tpu.memory_space<vmem>>, vector<256x128xf32>
    %c0_2 = arith.constant 0 : index
    %c0_3 = arith.constant 0 : index
    %4 = vector.load %arg3[%c0_2, %c0_3] : memref<256x128xbf16, #tpu.memory_space<vmem>>, vector<256x128xbf16>
    %c0_4 = arith.constant 0 : index
    %c0_5 = arith.constant 0 : index
    %5 = vector.load %arg4[%c0_4, %c0_5] : memref<128x128xbf16, #tpu.memory_space<vmem>>, vector<128x128xbf16>
    %cst = arith.constant dense<0.000000e+00> : vector<256x128xf32>
    %6 = tpu.matmul %4, %5, %cst {dimension_numbers = #tpu.dot_dimension_numbers<[1], [0], [0], [1], [0, 0, 1, 1], [], []>} : vector<256x128xbf16>, vector<128x128xbf16>, vector<256x128xf32> -> vector<256x128xf32>
    %7 = arith.addf %3, %6 : vector<256x128xf32>
    %c0_6 = arith.constant 0 : index
    %c0_7 = arith.constant 0 : index
    %8 = vector.load %arg8[%c0_6, %c0_7] : memref<256x128xf32, #tpu.memory_space<vmem>>, vector<256x128xf32>
    tpu.vector_store %arg8[%c0_6, %c0_7], %7 {strides = array<i32>} : memref<256x128xf32, #tpu.memory_space<vmem>>, vector<256x128xf32>,
    %c0_i32_8 = arith.constant 0 : i32
    %9 = arith.cmpi eq, %arg2, %c0_i32_8 : i32
    %10 = arith.extui %9 : i1 to i32
    %c0_i32_9 = arith.constant 0 : i32
    %11 = arith.cmpi ne, %10, %c0_i32_9 : i32
    scf.if %11 {
      %c0_10 = arith.constant 0 : index
      %c0_11 = arith.constant 0 : index
      %12 = vector.load %arg8[%c0_10, %c0_11] : memref<256x128xf32, #tpu.memory_space<vmem>>, vector<256x128xf32>
      %c0_12 = arith.constant 0 : index
      %c0_13 = arith.constant 0 : index
      %13 = vector.load %arg5[%c0_12, %c0_13] : memref<1x128xf32, #tpu.memory_space<vmem>>, vector<1x128xf32>
      %14 = vector.broadcast %13 : vector<1x128xf32> to vector<256x128xf32>
      %15 = arith.mulf %12, %14 : vector<256x128xf32>
      %c0_14 = arith.constant 0 : index
      %c0_15 = arith.constant 0 : index
      %16 = vector.load %arg6[%c0_14, %c0_15] : memref<1x128xf32, #tpu.memory_space<vmem>>, vector<1x128xf32>
      %17 = vector.broadcast %16 : vector<1x128xf32> to vector<256x128xf32>
      %18 = arith.addf %15, %17 : vector<256x128xf32>
      %cst_16 = arith.constant 0.000000e+00 : f32
      %19 = vector.broadcast %cst_16 : f32 to vector<256x128xf32>
      %20 = arith.maximumf %18, %19 : vector<256x128xf32>
      %21 = arith.truncf %20 : vector<256x128xf32> to vector<256x128xbf16>
      %c0_17 = arith.constant 0 : index
      %c0_18 = arith.constant 0 : index
      %22 = vector.load %arg7[%c0_17, %c0_18] : memref<256x128xbf16, #tpu.memory_space<vmem>>, vector<256x128xbf16>
      tpu.vector_store %arg7[%c0_17, %c0_18], %21 {strides = array<i32>} : memref<256x128xbf16, #tpu.memory_space<vmem>>, vector<256x128xbf16>,
    } else {
    }
    return
  }
  func.func @transform_0(%arg0: i32, %arg1: i32, %arg2: i32) -> (i32, i32) {
    %c0_i32 = arith.constant 0 : i32
    return %arg0, %arg2 : i32, i32
  }
  func.func @transform_1(%arg0: i32, %arg1: i32, %arg2: i32) -> (i32, i32) {
    %c0_i32 = arith.constant 0 : i32
    return %arg2, %arg1 : i32, i32
  }
  func.func @transform_2(%arg0: i32, %arg1: i32, %arg2: i32) -> (i32, i32) {
    %c0_i32 = arith.constant 0 : i32
    %c0_i32_0 = arith.constant 0 : i32
    return %c0_i32, %arg1 : i32, i32
  }
  func.func @transform_3(%arg0: i32, %arg1: i32, %arg2: i32) -> (i32, i32) {
    %c0_i32 = arith.constant 0 : i32
    %c0_i32_0 = arith.constant 0 : i32
    return %c0_i32, %arg1 : i32, i32
  }
  func.func @transform_4(%arg0: i32, %arg1: i32, %arg2: i32) -> (i32, i32) {
    %c0_i32 = arith.constant 0 : i32
    return %arg0, %arg1 : i32, i32
  }
}

</mosaic_0001>

<bundles_post_ra>
// kernel: gemm_affine_act.1
= control target key start
LH: loop header
LB: loop body
LE: loop exit
PB: predicated region body
PF: predicated region fallthrough
CT: control target
= control target key end

     0   :  { %s1598_s15 = smov 0   ;;  %s1600_s16 = smov 0   ;;  %s1772_s0 = inlined_call_operand.vmem [shape: bf16[2048,128], index: 0, kind: input, shape index: {}]   ;;  %s1773_s1 = inlined_call_operand.vmem [shape: bf16[128,128], index: 1, kind: input, shape index: {}]   ;;  %s1774_s2 = inlined_call_operand.vmem [shape: f32[1,128], index: 2, kind: input, shape index: {}]   ;;  %s1775_s3 = inlined_call_operand.vmem [shape: f32[1,128], index: 3, kind: input, shape index: {}]   ;;  %s1776_s4 = inlined_call_operand.vmem [shape: bf16[2048,128], index: 4, kind: output, shape index: {}]  }
   0x1   :  { %s1602_s17 = smov 0  }
   0x2 LB: > { %s33_s18 = sadd.s32 1, %s1567_s16  ;;  %p1221_p0 = scmp.ge.s32.totalorder %s1571_s17, 1  ;;  %s1571_s17 = sphi %s1602_s17, %s14_s17   ;;  %s1567_s16 = sphi %s1600_s16, %s1778_s16   ;;  %s1563_s15 = sphi %s1598_s15, %s1777_s15  }
   0x3   : > { %p35_p1 = scmp.ge.s32.totalorder %s33_s18, 8  ;;  %p221_p2 = scmp.lt.s32.totalorder %s1571_s17, 9 }
   0x5   : > { %s1780_s18 = smov (%p35_p1, %s33_s18), 0  ;;  %p222_p3 = pnand %p1221_p0, %p221_p2 }
   0x6   : > { %v1525_v0 = vld [vmem:[%s1773_s1] sm:$0xff] (!%p222_p3)   ;;  %s1222_s21 = sshll.u32 (!%p222_p3), %s1563_s15, 5  ;;  %v1526_v1 = vld [vmem:[%s1773_s1 + $0x8] sm:$0xff] (!%p222_p3)   ;;  %v1527_v2 = vld [vmem:[%s1773_s1 + $0x10] sm:$0xff] (!%p222_p3)  }
   0x7   : > { %225 = sbr.rel (%p222_p3) target bundleno = 288 (0x120), region = 36  ;;  %p268_p4 = scmp.lt.s32.totalorder (!%p222_p3), %s1222_s21, 255  ;;  %1437 = vmatprep.subr.bf16.mxu0 (!%p222_p3), %v1525_v0  ;;  %1485 = vmatprep.subr.bf16.mxu1 (!%p222_p3), %v1525_v0  ;;  %v1528_v3 = vld [vmem:[%s1773_s1 + $0x18] sm:$0xff] (!%p222_p3)   ;;  %v1529_v6 = vld [vmem:[%s1773_s1 + $0x20] sm:$0xff] (!%p222_p3)   ;;  %v1530_v7 = vld [vmem:[%s1773_s1 + $0x28] sm:$0xff] (!%p222_p3)  }
   0x8   : > { %1438 = vmatpush3.bf16.msra.mxu0 (!%p222_p3), %v1525_v0  ;;  %1493 = vmatpush3.bf16.msra.mxu1 (!%p222_p3), %v1525_v0  ;;  %v1531_v8 = vld [vmem:[%s1773_s1 + $0x30] sm:$0xff] (!%p222_p3)   ;;  %v1532_v9 = vld [vmem:[%s1773_s1 + $0x38] sm:$0xff] (!%p222_p3)   ;;  %v1669_v24 = vld [vmem:[%s1774_s2] ss:$0 sm:$0xff] (!%p222_p3) }
   0x9   : > { %1439 = vmatprep.subr.bf16.mxu0 (!%p222_p3), %v1526_v1  ;;  %1486 = vmatprep.subr.bf16.mxu1 (!%p222_p3), %v1526_v1  ;;  %v1674_v26 = vld [vmem:[%s1775_s3] ss:$0 sm:$0xff] (!%p222_p3) }
   0xc   : > { %1440 = vmatpush3.bf16.msra.mxu0 (!%p222_p3), %v1526_v1  ;;  %1494 = vmatpush3.bf16.msra.mxu1 (!%p222_p3), %v1526_v1 }
   0xd   : > { %1441 = vmatprep.subr.bf16.mxu0 (!%p222_p3), %v1527_v2  ;;  %1487 = vmatprep.subr.bf16.mxu1 (!%p222_p3), %v1527_v2 }
   0xe   : > { %s1782_s21 = smov (!%p268_p4, %s1222_s21), 255 }
   0xf   : > { %s1223_s26 = sshll.u32 %s1782_s21, 2 }
  0x10   : > { %s1633_s29 = scalar_lea.vmem %s1772_s0, %s1223_s26  ;;  %1442 = vmatpush3.bf16.msra.mxu0 %v1527_v2  ;;  %1495 = vmatpush3.bf16.msra.mxu1 %v1527_v2  ;;  %s1697_s24 = scalar_lea.vmem %s1776_s4, %s1223_s26 }
  0x11   : > { %v1533_v4 = vld [vmem:[%s1633_s29] sm:$0xff]   ;;  %1443 = vmatprep.subr.bf16.mxu0 %v1528_v3  ;;  %1488 = vmatprep.subr.bf16.mxu1 %v1528_v3  ;;  %v1535_v10 = vld [vmem:[%s1633_s29 + $0x8] sm:$0xff]   ;;  %v1537_v12 = vld [vmem:[%s1633_s29 + $0x10] sm:$0xff]  }
  0x12   : > { %v1534_v5 = vld [vmem:[%s1633_s29 + $0x40] sm:$0xff]   ;;  %1453 = vmatprep.mubr.bf16.mxu0 %v1533_v4  ;;  %v1536_v11 = vld [vmem:[%s1633_s29 + $0x48] sm:$0xff]   ;;  %v1538_v13 = vld [vmem:[%s1633_s29 + $0x50] sm:$0xff]  }
  0x13   : > { %1469 = vmatprep.mubr.bf16.mxu1 %v1534_v5  ;;  %v1539_v14 = vld [vmem:[%s1633_s29 + $0x18] sm:$0xff]   ;;  %v1541_v16 = vld [vmem:[%s1633_s29 + $0x20] sm:$0xff]   ;;  %v1543_v18 = vld [vmem:[%s1633_s29 + $0x28] sm:$0xff]  }
  0x14   : > { %1444 = vmatpush3.bf16.msra.mxu0 %v1528_v3  ;;  %1496 = vmatpush3.bf16.msra.mxu1 %v1528_v3  ;;  %v1540_v15 = vld [vmem:[%s1633_s29 + $0x58] sm:$0xff]   ;;  %v1542_v17 = vld [vmem:[%s1633_s29 + $0x60] sm:$0xff]   ;;  %v1544_v19 = vld [vmem:[%s1633_s29 + $0x68] sm:$0xff]  }
  0x15   : > { %1445 = vmatprep.subr.bf16.mxu0 %v1529_v6  ;;  %1489 = vmatprep.subr.bf16.mxu1 %v1529_v6  ;;  %v1545_v20 = vld [vmem:[%s1633_s29 + $0x30] sm:$0xff]   ;;  %v1547_v22 = vld [vmem:[%s1633_s29 + $0x38] sm:$0xff]  }
  0x16   : > { %v1546_v21 = vld [vmem:[%s1633_s29 + $0x70] sm:$0xff]   ;;  %v1548_v23 = vld [vmem:[%s1633_s29 + $0x78] sm:$0xff]  }
  0x18   : > { %1446 = vmatpush3.bf16.msra.mxu0 %v1529_v6  ;;  %1497 = vmatpush3.bf16.msra.mxu1 %v1529_v6 }
  0x19   : > { %1447 = vmatprep.subr.bf16.mxu0 %v1530_v7  ;;  %1490 = vmatprep.subr.bf16.mxu1 %v1530_v7 }
  0x1c   : > { %1448 = vmatpush3.bf16.msra.mxu0 %v1530_v7  ;;  %1498 = vmatpush3.bf16.msra.mxu1 %v1530_v7 }
  0x1d   : > { %1449 = vmatprep.subr.bf16.mxu0 %v1531_v8  ;;  %1491 = vmatprep.subr.bf16.mxu1 %v1531_v8 }
  0x20   : > { %1450 = vmatpush3.bf16.msra.mxu0 %v1531_v8  ;;  %1499 = vmatpush3.bf16.msra.mxu1 %v1531_v8 }
  0x21   : > { %1451 = vmatprep.subr.bf16.mxu0 %v1532_v9  ;;  %1492 = vmatprep.subr.bf16.mxu1 %v1532_v9 }
  0x24   : > { %1452 = vmatpush3.bf16.msra.mxu0 %v1532_v9  ;;  %1500 = vmatpush3.bf16.msra.mxu1 %v1532_v9 }
  0x27   : > { %1454 = vmatmul.mubr.bf16.vlgmr.msra.gmra.mrb[0].mxu0 %v1535_v10  ;;  %1470 = vmatmul.mubr.bf16.vlgmr.msra.gmra.mrb[0].mxu1 %v1536_v11 }
  0x28   : > { %1457 = vmatprep.mubr.bf16.mxu0 %v1537_v12  ;;  %1473 = vmatprep.mubr.bf16.mxu1 %v1538_v13 }
  0x2f   : > { %1458 = vmatmul.mubr.bf16.gmra.mrb[4].mxu0 %v1539_v14  ;;  %1474 = vmatmul.mubr.bf16.gmra.mrb[4].mxu1 %v1540_v15 }
  0x30   : > { %1461 = vmatprep.mubr.bf16.mxu0 %v1541_v16  ;;  %1477 = vmatprep.mubr.bf16.mxu1 %v1542_v17 }
  0x37   : > { %1462 = vmatmul.mubr.bf16.gmra.mrb[8].mxu0 %v1543_v18  ;;  %1478 = vmatmul.mubr.bf16.gmra.mrb[8].mxu1 %v1544_v19 }
  0x38   : > { %1465 = vmatprep.mubr.bf16.mxu0 %v1545_v20  ;;  %1481 = vmatprep.mubr.bf16.mxu1 %v1546_v21 }
  0x3f   : > { %1466 = vmatmul.mubr.bf16.gmra.mrb[12].mxu0 %v1547_v22  ;;  %1482 = vmatmul.mubr.bf16.gmra.mrb[12].mxu1 %v1548_v23 }
  0xfa   : > { %v1455_v25 = vpop.f32.mrb[0].mxu0  ;;  %v1471_v27 = vpop.f32.mrb[0].mxu1 }
  0xfb   : > { %v830_v28 = vmul.f32 %v1455_v25, %v1669_v24  ;;  %v846_v29 = vmul.f32 %v1471_v27, %v1669_v24  ;;  %v595_v30 = vpop.f32.mrb[1].mxu0  ;;  %v659_v31 = vpop.f32.mrb[1].mxu1 }
  0xfc   : > { %v828_v32 = vmul.f32 %v1669_v24, %v595_v30  ;;  %v844_v33 = vmul.f32 %v1669_v24, %v659_v31  ;;  %v1456_v34 = vpop.f32.mrb[2].mxu0  ;;  %v1472_v35 = vpop.f32.mrb[2].mxu1 }
  0xfd   : > { %v869_v36 = vadd.f32 %v1674_v26, %v830_v28  ;;  %v885_v37 = vadd.f32 %v1674_v26, %v846_v29  ;;  %v831_v38 = vmul.f32 %v1456_v34, %v1669_v24  ;;  %v847_v39 = vmul.f32 %v1472_v35, %v1669_v24  ;;  %v598_v40 = vpop.f32.mrb[3].mxu0  ;;  %v662_v41 = vpop.f32.mrb[3].mxu1 }
  0xfe   : > { %v867_v42 = vadd.f32 %v1674_v26, %v828_v32  ;;  %v883_v43 = vadd.f32 %v1674_v26, %v844_v33  ;;  %v829_v44 = vmul.f32 %v1669_v24, %v598_v40  ;;  %v845_v45 = vmul.f32 %v1669_v24, %v662_v41 }
  0xff   : > { %v870_v46 = vadd.f32 %v1674_v26, %v831_v38  ;;  %v886_v47 = vadd.f32 %v1674_v26, %v847_v39  ;;  %v901_v50 = vmax.f32 %v869_v36, 0.0  ;;  %v917_v51 = vmax.f32 %v885_v37, 0.0 }
 0x100   : > { %v868_v48 = vadd.f32 %v1674_v26, %v829_v44  ;;  %v884_v49 = vadd.f32 %v1674_v26, %v845_v45  ;;  %v899_v54 = vmax.f32 %v867_v42, 0.0  ;;  %v915_v55 = vmax.f32 %v883_v43, 0.0 }
 0x101   : > { %v902_v52 = vmax.f32 %v870_v46, 0.0  ;;  %v918_v53 = vmax.f32 %v886_v47, 0.0 }
 0x102   : > { %v900_v56 = vmax.f32 %v868_v48, 0.0  ;;  %v916_v57 = vmax.f32 %v884_v49, 0.0  ;;  %v1459_v58 = vpop.f32.mrb[4].mxu0  ;;  %v1475_v59 = vpop.f32.mrb[4].mxu1 }
 0x103   : > { %v1326_v60 = vpack.c.bf16 %v902_v52, %v901_v50  ;;  %v1366_v61 = vpack.c.bf16 %v918_v53, %v917_v51  ;;  %v834_v62 = vmul.f32 %v1459_v58, %v1669_v24  ;;  %v850_v63 = vmul.f32 %v1475_v59, %v1669_v24  ;;  %v611_v0 = vpop.f32.mrb[5].mxu0  ;;  %v675_v1 = vpop.f32.mrb[5].mxu1 }
 0x104   : > { %v1321_v2 = vpack.c.bf16 %v900_v56, %v899_v54  ;;  %v1361_v3 = vpack.c.bf16 %v916_v57, %v915_v55  ;;  %v832_v4 = vmul.f32 %v1669_v24, %v611_v0  ;;  %v848_v5 = vmul.f32 %v1669_v24, %v675_v1  ;;  %v1460_v6 = vpop.f32.mrb[6].mxu0  ;;  %v1476_v7 = vpop.f32.mrb[6].mxu1 }
 0x105   : > { %1398 = vst [vmem:[%s1697_s24 + $0x8] sm:$0xff] %v1326_v60   ;;  %1406 = vst [vmem:[%s1697_s24 + $0x48] sm:$0xff] %v1366_v61   ;;  %v873_v8 = vadd.f32 %v1674_v26, %v834_v62  ;;  %v889_v9 = vadd.f32 %v1674_v26, %v850_v63  ;;  %v835_v10 = vmul.f32 %v1460_v6, %v1669_v24  ;;  %v614_v12 = vpop.f32.mrb[7].mxu0  ;;  %v678_v13 = vpop.f32.mrb[7].mxu1 }
 0x106   : > { %v851_v11 = vmul.f32 %v1476_v7, %v1669_v24  ;;  %1322 = vst [vmem:[%s1697_s24] sm:$0xff] %v1321_v2   ;;  %1405 = vst [vmem:[%s1697_s24 + $0x40] sm:$0xff] %v1361_v3   ;;  %v871_v14 = vadd.f32 %v1674_v26, %v832_v4  ;;  %v887_v15 = vadd.f32 %v1674_v26, %v848_v5 }
 0x107   : > { %v833_v16 = vmul.f32 %v1669_v24, %v614_v12  ;;  %v849_v17 = vmul.f32 %v1669_v24, %v678_v13  ;;  %v874_v18 = vadd.f32 %v1674_v26, %v835_v10  ;;  %v905_v22 = vmax.f32 %v873_v8, 0.0 }
 0x108   : > { %v890_v19 = vadd.f32 %v1674_v26, %v851_v11  ;;  %v921_v23 = vmax.f32 %v889_v9, 0.0  ;;  %v903_v28 = vmax.f32 %v871_v14, 0.0  ;;  %v919_v29 = vmax.f32 %v887_v15, 0.0 }
 0x109   : > { %v872_v20 = vadd.f32 %v1674_v26, %v833_v16  ;;  %v888_v21 = vadd.f32 %v1674_v26, %v849_v17  ;;  %v906_v25 = vmax.f32 %v874_v18, 0.0 }
 0x10a   : > { %v922_v27 = vmax.f32 %v890_v19, 0.0  ;;  %v1463_v32 = vpop.f32.mrb[8].mxu0  ;;  %v1479_v33 = vpop.f32.mrb[8].mxu1 }
 0x10b   : > { %v904_v30 = vmax.f32 %v872_v20, 0.0  ;;  %v920_v31 = vmax.f32 %v888_v21, 0.0  ;;  %v1336_v34 = vpack.c.bf16 %v906_v25, %v905_v22  ;;  %v838_v36 = vmul.f32 %v1463_v32, %v1669_v24  ;;  %v627_v38 = vpop.f32.mrb[9].mxu0  ;;  %v691_v39 = vpop.f32.mrb[9].mxu1 }
 0x10c   : > { %v1376_v35 = vpack.c.bf16 %v922_v27, %v921_v23  ;;  %v854_v37 = vmul.f32 %v1479_v33, %v1669_v24  ;;  %v836_v42 = vmul.f32 %v1669_v24, %v627_v38  ;;  %v852_v43 = vmul.f32 %v1669_v24, %v691_v39  ;;  %v1464_v44 = vpop.f32.mrb[10].mxu0  ;;  %v1480_v45 = vpop.f32.mrb[10].mxu1 }
 0x10d   : > { %v1331_v40 = vpack.c.bf16 %v904_v30, %v903_v28  ;;  %v1371_v41 = vpack.c.bf16 %v920_v31, %v919_v29  ;;  %1400 = vst [vmem:[%s1697_s24 + $0x18] sm:$0xff] %v1336_v34   ;;  %v877_v46 = vadd.f32 %v1674_v26, %v838_v36  ;;  %v839_v48 = vmul.f32 %v1464_v44, %v1669_v24  ;;  %v630_v50 = vpop.f32.mrb[11].mxu0  ;;  %v694_v51 = vpop.f32.mrb[11].mxu1 }
 0x10e   : > { %1408 = vst [vmem:[%s1697_s24 + $0x58] sm:$0xff] %v1376_v35   ;;  %v893_v47 = vadd.f32 %v1674_v26, %v854_v37  ;;  %v855_v49 = vmul.f32 %v1480_v45, %v1669_v24  ;;  %v875_v52 = vadd.f32 %v1674_v26, %v836_v42  ;;  %v891_v53 = vadd.f32 %v1674_v26, %v852_v43 }
 0x10f   : > { %1399 = vst [vmem:[%s1697_s24 + $0x10] sm:$0xff] %v1331_v40   ;;  %1407 = vst [vmem:[%s1697_s24 + $0x50] sm:$0xff] %v1371_v41   ;;  %v837_v54 = vmul.f32 %v1669_v24, %v630_v50  ;;  %v853_v55 = vmul.f32 %v1669_v24, %v694_v51  ;;  %v878_v56 = vadd.f32 %v1674_v26, %v839_v48  ;;  %v909_v60 = vmax.f32 %v877_v46, 0.0 }
 0x110   : > { %v894_v57 = vadd.f32 %v1674_v26, %v855_v49  ;;  %v925_v61 = vmax.f32 %v893_v47, 0.0  ;;  %v907_v0 = vmax.f32 %v875_v52, 0.0  ;;  %v923_v1 = vmax.f32 %v891_v53, 0.0 }
 0x111   : > { %v876_v58 = vadd.f32 %v1674_v26, %v837_v54  ;;  %v892_v59 = vadd.f32 %v1674_v26, %v853_v55  ;;  %v910_v62 = vmax.f32 %v878_v56, 0.0 }
 0x112   : > { %v926_v63 = vmax.f32 %v894_v57, 0.0  ;;  %v1467_v4 = vpop.f32.mrb[12].mxu0  ;;  %v1483_v5 = vpop.f32.mrb[12].mxu1 }
 0x113   : > { %v908_v2 = vmax.f32 %v876_v58, 0.0  ;;  %v924_v3 = vmax.f32 %v892_v59, 0.0  ;;  %v1346_v6 = vpack.c.bf16 %v910_v62, %v909_v60  ;;  %v842_v8 = vmul.f32 %v1467_v4, %v1669_v24  ;;  %v643_v10 = vpop.f32.mrb[13].mxu0  ;;  %v707_v11 = vpop.f32.mrb[13].mxu1 }
 0x114   : > { %v1386_v7 = vpack.c.bf16 %v926_v63, %v925_v61  ;;  %v858_v9 = vmul.f32 %v1483_v5, %v1669_v24  ;;  %v840_v14 = vmul.f32 %v1669_v24, %v643_v10  ;;  %v856_v15 = vmul.f32 %v1669_v24, %v707_v11  ;;  %v1468_v16 = vpop.f32.mrb[14].mxu0  ;;  %v1484_v17 = vpop.f32.mrb[14].mxu1 }
 0x115   : > { %v1341_v12 = vpack.c.bf16 %v908_v2, %v907_v0  ;;  %v1381_v13 = vpack.c.bf16 %v924_v3, %v923_v1  ;;  %1402 = vst [vmem:[%s1697_s24 + $0x28] sm:$0xff] %v1346_v6   ;;  %v881_v18 = vadd.f32 %v1674_v26, %v842_v8  ;;  %v843_v20 = vmul.f32 %v1468_v16, %v1669_v24  ;;  %v646_v22 = vpop.f32.mrb[15].mxu0  ;;  %v710_v23 = vpop.f32.mrb[15].mxu1 }
 0x116   : > { %1410 = vst [vmem:[%s1697_s24 + $0x68] sm:$0xff] %v1386_v7   ;;  %v897_v19 = vadd.f32 %v1674_v26, %v858_v9  ;;  %v859_v21 = vmul.f32 %v1484_v17, %v1669_v24  ;;  %v879_v25 = vadd.f32 %v1674_v26, %v840_v14  ;;  %v895_v27 = vadd.f32 %v1674_v26, %v856_v15 }
 0x117   : > { %1401 = vst [vmem:[%s1697_s24 + $0x20] sm:$0xff] %v1341_v12   ;;  %1409 = vst [vmem:[%s1697_s24 + $0x60] sm:$0xff] %v1381_v13   ;;  %v841_v28 = vmul.f32 %v1669_v24, %v646_v22  ;;  %v857_v29 = vmul.f32 %v1669_v24, %v710_v23  ;;  %v882_v30 = vadd.f32 %v1674_v26, %v843_v20  ;;  %v913_v34 = vmax.f32 %v881_v18, 0.0 }
 0x118   : > { %v898_v31 = vadd.f32 %v1674_v26, %v859_v21  ;;  %v929_v35 = vmax.f32 %v897_v19, 0.0  ;;  %v911_v38 = vmax.f32 %v879_v25, 0.0  ;;  %v927_v39 = vmax.f32 %v895_v27, 0.0 }
 0x119   : > { %v880_v32 = vadd.f32 %v1674_v26, %v841_v28  ;;  %v896_v33 = vadd.f32 %v1674_v26, %v857_v29  ;;  %v914_v36 = vmax.f32 %v882_v30, 0.0 }
 0x11a   : > { %v930_v37 = vmax.f32 %v898_v31, 0.0 }
 0x11b   : > { %v912_v40 = vmax.f32 %v880_v32, 0.0  ;;  %v928_v24 = vmax.f32 %v896_v33, 0.0  ;;  %v1356_v41 = vpack.c.bf16 %v914_v36, %v913_v34 }
 0x11c   : > { %v1396_v42 = vpack.c.bf16 %v930_v37, %v929_v35 }
 0x11d   : > { %v1351_v43 = vpack.c.bf16 %v912_v40, %v911_v38  ;;  %v1391_v44 = vpack.c.bf16 %v928_v24, %v927_v39  ;;  %1404 = vst [vmem:[%s1697_s24 + $0x38] sm:$0xff] %v1356_v41  }
 0x11e   : > { %1412 = vst [vmem:[%s1697_s24 + $0x78] sm:$0xff] %v1396_v42  }
 0x11f   : > { %1403 = vst [vmem:[%s1697_s24 + $0x30] sm:$0xff] %v1351_v43   ;;  %1411 = vst [vmem:[%s1697_s24 + $0x70] sm:$0xff] %v1391_v44  }
 0x120 PF: > { %s14_s17 = sadd.s32 1, %s1571_s17   ;;  %s1777_s15 = smov %s1567_s16 }
 0x121   : > { %p11_p5 = scmp.ge.s32.totalorder %s14_s17, 10   ;;  %s1778_s16 = smov %s1780_s18 }
 0x123   :  { %13 = sbr.rel (!%p11_p5) target bundleno = 2 (0x2), region = 83 }

</bundles_post_ra>
